<compile_context>
chip_gen: v7x
topology: tpu7x:2x2x1
jax: 0.10.0
libtpu: 0.0.40
codegen_flags: <defaults>
</compile_context>

<pallas_src>
import math

import jax
import jax.numpy as jnp
from jax.experimental import pallas as pl
from jax.experimental.pallas import tpu as pltpu


def _round_up(x, m):
    return ((x + m - 1) // m) * m


def _prep_kernel(x_ref, w_ref, b_ref, o_ref, acc_ref):
    # x_ref: (tm, tk) bf16, w_ref: (tk, tn) bf16, b_ref: (1, tn) f32,
    # o_ref: (tm, tn) out dtype, acc_ref: (tm, tn) f32 scratch.
    k = pl.program_id(2)

    @pl.when(k == 0)
    def _():
        acc_ref[...] = jnp.zeros_like(acc_ref)

    acc_ref[...] += jnp.dot(
        x_ref[...], w_ref[...], preferred_element_type=jnp.float32
    )

    @pl.when(k == pl.num_programs(2) - 1)
    def _():
        o_ref[...] = (acc_ref[...] + b_ref[...]).astype(o_ref.dtype)


def preparation_forward(x_nchw, weight, bias, *, compute_dtype=jnp.bfloat16):
    """x_nchw: (B, C, H, W); weight: (K, N); bias: (N,). Returns (B, N) in x dtype."""
    B = x_nchw.shape[0]
    K = math.prod(x_nchw.shape[1:])
    N = weight.shape[1]
    assert weight.shape[0] == K, (weight.shape, K)

    out_dtype = x_nchw.dtype

    # Tile sizes: 128-aligned on lanes, 8-aligned on sublanes, capped so the
    # double-buffered VMEM footprint is small on every generation.
    tm = min(256, _round_up(B, 8))
    tn = min(256, _round_up(N, 128))
    tk = min(512, _round_up(K, 128))

    Bp = _round_up(B, tm)
    Np = _round_up(N, tn)
    Kp = _round_up(K, tk)

    # Glue: flatten NCHW -> (B, K), cast operands to bf16, pad ragged edges.
    x2d = x_nchw.reshape(B, K).astype(compute_dtype)
    w = weight.astype(compute_dtype)
    b2d = bias.reshape(1, N).astype(jnp.float32)

    if (Bp, Kp) != (B, K):
        x2d = jnp.pad(x2d, ((0, Bp - B), (0, Kp - K)))
    if (Kp, Np) != (K, N):
        w = jnp.pad(w, ((0, Kp - K), (0, Np - N)))
    if Np != N:
        b2d = jnp.pad(b2d, ((0, 0), (0, Np - N)))

    grid = (Bp // tm, Np // tn, Kp // tk)

    out = pl.pallas_call(
        _prep_kernel,
        out_shape=jax.ShapeDtypeStruct((Bp, Np), out_dtype),
        grid=grid,
        in_specs=[
            pl.BlockSpec((tm, tk), lambda i, j, k: (i, k)),   # activations
            pl.BlockSpec((tk, tn), lambda i, j, k: (k, j)),   # weights
            pl.BlockSpec((1, tn), lambda i, j, k: (0, j)),    # bias: once per N-tile
        ],
        out_specs=pl.BlockSpec((tm, tn), lambda i, j, k: (i, j)),
        scratch_shapes=[pltpu.VMEM((tm, tn), jnp.float32)],
        compiler_params=pltpu.CompilerParams(
            dimension_semantics=("parallel", "parallel", "arbitrary"),
            vmem_limit_bytes=32 * 1024 * 1024,
        ),
    )(x2d, w, b2d)

    return out[:B, :N]


if __name__ == "__main__":
    # Small shapes consistent with the module: input_shape = (4, 16, 16),
    # output_size = 32, batch = 2.
    B, C, H, W = 2, 4, 16, 16
    output_size = 32
    K = C * H * W

    key = jax.random.PRNGKey(0)
    kx, kw, kb = jax.random.split(key, 3)

    x = jax.random.normal(kx, (B, C, H, W), dtype=jnp.float32)
    # Deterministic parameter init (Kaiming-uniform-like scale).
    limit = 1.0 / math.sqrt(float(K))
    weight = jax.random.uniform(kw, (K, output_size), dtype=jnp.float32,
                                minval=-limit, maxval=limit)
    bias = jax.random.uniform(kb, (output_size,), dtype=jnp.float32,
                              minval=-limit, maxval=limit)

    out = preparation_forward(x, weight, bias)
    out = jax.block_until_ready(out)
    assert out.shape == (B, output_size)

    # Cross-check 1: against a reference using the same bf16 operand rounding
    # (tight tolerance — exercises the tiling/accumulation/bias logic exactly).
    x_bf = x.reshape(B, K).astype(jnp.bfloat16)
    w_bf = weight.astype(jnp.bfloat16)
    ref_bf = jnp.dot(x_bf, w_bf, preferred_element_type=jnp.float32) + bias
    assert jnp.allclose(out, ref_bf, atol=1e-4, rtol=1e-4)

    # Cross-check 2: against the full-f32 reference (loose tolerance for the
    # bf16 input rounding).
    ref_f32 = x.reshape(B, K) @ weight + bias
    assert jnp.allclose(out, ref_f32, atol=5e-2, rtol=5e-2)

    print("KERNEL_OK")
</pallas_src>

<mosaic_0001>
module attributes {stable_mosaic.version = 11 : i64} {
  func.func @_prep_kernel(%arg0: i32, %arg1: i32, %arg2: i32, %arg3: memref<8x512xbf16, #tpu.memory_space<vmem>>, %arg4: memref<512x128xbf16, #tpu.memory_space<vmem>>, %arg5: memref<1x128xf32, #tpu.memory_space<vmem>>, %arg6: memref<8x128xf32, #tpu.memory_space<vmem>>, %arg7: memref<8x128xf32, #tpu.memory_space<vmem>>) attributes {dimension_semantics = [#tpu.dimension_semantics<parallel>, #tpu.dimension_semantics<parallel>, #tpu.dimension_semantics<arbitrary>], iteration_bounds = array<i64: 1, 1, 2>, scalar_prefetch = 0 : i64, scratch_operands = 1 : i64, tpu.core_type = #tpu.core_type<tc>, window_params = [{transform_indices = @transform_0, window_bounds = array<i64: 8, 512>}, {transform_indices = @transform_1, window_bounds = array<i64: 512, 128>}, {transform_indices = @transform_2, window_bounds = array<i64: 1, 128>}, {transform_indices = @transform_3, window_bounds = array<i64: 8, 128>}]} {
    %c0_i32 = arith.constant 0 : i32
    %0 = arith.cmpi eq, %arg2, %c0_i32 : i32
    %1 = arith.extui %0 : i1 to i32
    %c0_i32_0 = arith.constant 0 : i32
    %2 = arith.cmpi ne, %1, %c0_i32_0 : i32
    scf.if %2 {
      %cst_9 = arith.constant 0.000000e+00 : f32
      %12 = vector.broadcast %cst_9 : f32 to vector<8x128xf32>
      %c0_10 = arith.constant 0 : index
      %c0_11 = arith.constant 0 : index
      %13 = vector.load %arg7[%c0_10, %c0_11] : memref<8x128xf32, #tpu.memory_space<vmem>>, vector<8x128xf32>
      tpu.vector_store %arg7[%c0_10, %c0_11], %12 {strides = array<i32>} : memref<8x128xf32, #tpu.memory_space<vmem>>, vector<8x128xf32>,
    } else {
    }
    %c0 = arith.constant 0 : index
    %c0_1 = arith.constant 0 : index
    %3 = vector.load %arg7[%c0, %c0_1] : memref<8x128xf32, #tpu.memory_space<vmem>>, vector<8x128xf32>
    %c0_2 = arith.constant 0 : index
    %c0_3 = arith.constant 0 : index
    %4 = vector.load %arg3[%c0_2, %c0_3] : memref<8x512xbf16, #tpu.memory_space<vmem>>, vector<8x512xbf16>
    %c0_4 = arith.constant 0 : index
    %c0_5 = arith.constant 0 : index
    %5 = vector.load %arg4[%c0_4, %c0_5] : memref<512x128xbf16, #tpu.memory_space<vmem>>, vector<512x128xbf16>
    %cst = arith.constant dense<0.000000e+00> : vector<8x128xf32>
    %6 = tpu.matmul %4, %5, %cst {dimension_numbers = #tpu.dot_dimension_numbers<[1], [0], [0], [1], [0, 0, 1, 1], [], []>} : vector<8x512xbf16>, vector<512x128xbf16>, vector<8x128xf32> -> vector<8x128xf32>
    %7 = arith.addf %3, %6 : vector<8x128xf32>
    %c0_6 = arith.constant 0 : index
    %c0_7 = arith.constant 0 : index
    %8 = vector.load %arg7[%c0_6, %c0_7] : memref<8x128xf32, #tpu.memory_space<vmem>>, vector<8x128xf32>
    tpu.vector_store %arg7[%c0_6, %c0_7], %7 {strides = array<i32>} : memref<8x128xf32, #tpu.memory_space<vmem>>, vector<8x128xf32>,
    %c1_i32 = arith.constant 1 : i32
    %9 = arith.cmpi eq, %arg2, %c1_i32 : i32
    %10 = arith.extui %9 : i1 to i32
    %c0_i32_8 = arith.constant 0 : i32
    %11 = arith.cmpi ne, %10, %c0_i32_8 : i32
    scf.if %11 {
      %c0_9 = arith.constant 0 : index
      %c0_10 = arith.constant 0 : index
      %12 = vector.load %arg7[%c0_9, %c0_10] : memref<8x128xf32, #tpu.memory_space<vmem>>, vector<8x128xf32>
      %c0_11 = arith.constant 0 : index
      %c0_12 = arith.constant 0 : index
      %13 = vector.load %arg5[%c0_11, %c0_12] : memref<1x128xf32, #tpu.memory_space<vmem>>, vector<1x128xf32>
      %14 = vector.broadcast %13 : vector<1x128xf32> to vector<8x128xf32>
      %15 = arith.addf %12, %14 : vector<8x128xf32>
      %c0_13 = arith.constant 0 : index
      %c0_14 = arith.constant 0 : index
      %16 = vector.load %arg6[%c0_13, %c0_14] : memref<8x128xf32, #tpu.memory_space<vmem>>, vector<8x128xf32>
      tpu.vector_store %arg6[%c0_13, %c0_14], %15 {strides = array<i32>} : memref<8x128xf32, #tpu.memory_space<vmem>>, vector<8x128xf32>,
    } else {
    }
    return
  }
  func.func @transform_0(%arg0: i32, %arg1: i32, %arg2: i32) -> (i32, i32) {
    %c0_i32 = arith.constant 0 : i32
    return %arg0, %arg2 : i32, i32
  }
  func.func @transform_1(%arg0: i32, %arg1: i32, %arg2: i32) -> (i32, i32) {
    %c0_i32 = arith.constant 0 : i32
    return %arg2, %arg1 : i32, i32
  }
  func.func @transform_2(%arg0: i32, %arg1: i32, %arg2: i32) -> (i32, i32) {
    %c0_i32 = arith.constant 0 : i32
    %c0_i32_0 = arith.constant 0 : i32
    return %c0_i32, %arg1 : i32, i32
  }
  func.func @transform_3(%arg0: i32, %arg1: i32, %arg2: i32) -> (i32, i32) {
    %c0_i32 = arith.constant 0 : i32
    return %arg0, %arg1 : i32, i32
  }
}

</mosaic_0001>

<bundles_post_ra>
// kernel: tpu_custom_call.1
= control target key start
LH: loop header
LB: loop body
LE: loop exit
PB: predicated region body
PF: predicated region fallthrough
CT: control target
= control target key end

     0   :  { %8 = vsyncpa [#allocation4], 0  ;;  %s1376_s0 = inlined_call_operand.hbm [shape: bf16[8,1024], index: 0, kind: input, shape index: {}]   ;;  %s1377_s1 = inlined_call_operand.hbm [shape: bf16[1024,128], index: 1, kind: input, shape index: {}]   ;;  %s1378_s2 = inlined_call_operand.vmem [shape: f32[1,128], index: 2, kind: input, shape index: {}]   ;;  %s1379_s3 = inlined_call_operand.hbm [shape: f32[8,128], index: 3, kind: output, shape index: {}]  }
   0x1   :  { %10 = vsyncpa [#allocation4 + $0x1], 0 }
   0x2   :  { %11 = vsyncpa [#allocation7], 0 }
   0x3   :  { %13 = vsyncpa [#allocation7 + $0x1], 0 }
   0x4   :  { %14 = vsyncpa [#allocation5], 0  ;;  %s1134_s12 = smov 0   ;;  %s1136_s13 = smov 0  }
   0x5   :  { %s1138_s14 = smov 0   ;;  %s1140_s15 = smov 0  }
   0x6   :  { %s1142_s16 = smov 0   ;;  %s1144_s17 = smov 0  }
   0x7 LB: > { %s754_s18 = sadd.s32 4294967295, %s1106_s17   ;;  %s32_s19 = sadd.s32 1, %s1102_s16  ;;  %s1106_s17 = sphi %s1144_s17, %s20_s17   ;;  %s1102_s16 = sphi %s1142_s16, %s1393_s16   ;;  %s1098_s15 = sphi %s1140_s15, %s1392_s15   ;;  %s1094_s14 = sphi %s1138_s14, %s1391_s14   ;;  %s1090_s13 = sphi %s1136_s13, %s1390_s13   ;;  %s1086_s12 = sphi %s1134_s12, %s1389_s12  }
   0x8   : > { %p33_p0 = scmp.ge.s32.totalorder %s32_s19, 2  ;;  %s48_s20 = sadd.s32 1, %s1094_s14 }
   0x9   : > { %p55_p1 = scmp.ne.s32.totalorder %s1094_s14, %s1090_s13  ;;  %p56_p2 = scmp.eq.s32.totalorder %s1106_s17, 0 }
   0xa   : > { %s1395_s19 = smov (%p33_p0, %s32_s19), 0  ;;  %p61_p4 = scmp.ne.s32.totalorder %s1090_s13, %s1086_s12 }
   0xb   : > { %p1170_p3 = por %p56_p2, %p55_p1  ;;  %s44_s22 = ssub.s32 %s1102_s16, %s1395_s19 }
   0xc   : > { %p62_p5 = scmp.eq.s32.totalorder %s754_s18, 0  ;;  %p46_p6 = scmp.eq.s32.totalorder %s44_s22, 0 }
   0xd   : > { %p871_p8 = scmp.lt.s32.totalorder %s1106_s17, 2  ;;  %s1188_s25 = sand.u32 1, %s1094_s14  }
   0xe   : > { %p1179_p7 = por %p62_p5, %p61_p4  ;;  %s810_s26 = sshll.u32 %s1102_s16, 8 }
   0xf   : > { %s1185_s24 = scalar_select %p46_p6, %s1094_s14, %s48_s20  }
  0x10   : > { %s1382_s23 = scalar_select %p1179_p7, 1, 0 }
  0x11   : > { %s758_s27 = sshll.u32 %s1188_s25, 4  ;;  %s1195_s30 = scalar_lea.hbm %s1376_s0, %s810_s26 }
  0x12   : > { %s177_s4 = scalar_lea.vmem [#allocation3], %s758_s27  ;;  %p1199_p9 = pnand %p871_p8, %p1170_p3 }
  0x13   : > { %s187_s5 = sshll.u32 %s177_s4, 4  ;;  %s174_s7 = scalar_lea.sflag [#allocation4], %s1188_s25  ;;  %s1203_s5 = int_to_ptr.vmem [resolvable:$true] %s187_s5 }
  0x14   : > { %s962_s8 = scalar_lea.hbm %s1195_s30, 256  ;;  %p964_p13 = pneg %p1199_p9 }
  0x15   : > { %p963_p12 = scmp.ne.s32.totalorder %s1195_s30, %s962_s8  ;;  %s967_s11 = scalar_lea.hbm %s1376_s0, 512 }
  0x16   : > { %p968_p2 = scmp.lt.u32.totalorder %s1195_s30, %s1376_s0  ;;  %p969_p3 = scmp.lt.u32.totalorder %s967_s11, %s962_s8 }
  0x17   : > { %p965_p0 = pnand %p964_p13, %p963_p12  ;;  %p971_p5 = scmp.lt.u32.totalorder %s962_s8, %s1195_s30 }
  0x18   : > { %p970_p4 = por %p969_p3, %p968_p2 }
  0x19   : > { %p966_p1 = pneg %p965_p0 }
  0x1a   : > { %p972_p6 = por %p971_p5, %p970_p4 }
  0x1c   : > { %p973_p8 = pnand %p972_p6, %p966_p1 }
  0x1e   : > { %976 = shalt.err (!%p973_p8)
}
  0x1f   : > { %s977_s21 = scalar_lea.vmem %s1203_s5, 256  ;;  %s1108_s22 = smov [#allocation3]  }
  0x20   : > { %p978_p12 = scmp.ne.s32.totalorder %s1203_s5, %s977_s21  ;;  %s982_s26 = sshll.u32 %s1108_s22, 4  ;;  %s983_s26 = int_to_ptr.vmem [resolvable:$false] %s982_s26 }
  0x21   : > { %s984_s27 = scalar_lea.vmem %s983_s26, 512  ;;  %p985_p11 = scmp.lt.s32.totalorder %s1203_s5, %s983_s26 }
  0x22   : > { %p980_p0 = pnand %p978_p12, %p964_p13  ;;  %p986_p2 = scmp.lt.s32.totalorder %s984_s27, %s977_s21 }
  0x24   : > { %p981_p10 = pneg %p980_p0  ;;  %p987_p3 = por %p986_p2, %p985_p11 }
  0x26   : > { %p988_p4 = pnand %p987_p3, %p981_p10 }
  0x28   : > { %991 = shalt.err (!%p988_p4)
}
  0x29   : > { %867 = dma.hbm_to_vmem [thread:$0]  (!%p1199_p9), %s1195_s30, 256, %s1203_s5, %s174_s7  }
  0x2a   : > { %p1384_p1 = scmp.lt.s32.totalorder %s1106_s17, 3  ;;  %p1385_p5 = scmp.ge.s32.totalorder %s1106_s17, 1 }
  0x2b   : > { %s761_s29 = sshll.u32 %s1188_s25, 8  ;;  %s811_s4 = sshll.u32 %s1102_s16, 12 }
  0x2c   : > { %p1237_p6 = pnand %p1385_p5, %p1384_p1  ;;  %s1246_s10 = scalar_lea.hbm %s1377_s1, %s811_s4 }
  0x2d   : > { %s198_s11 = scalar_lea.vmem [#allocation6], %s761_s29  ;;  %s195_s30 = scalar_lea.sflag [#allocation7], %s1188_s25 }
  0x2e   : > { %s206_s12 = sshll.u32 %s198_s11, 4  ;;  %s992_s5 = scalar_lea.hbm %s1246_s10, 4096  ;;  %s1248_s12 = int_to_ptr.vmem [resolvable:$true] %s206_s12 }
  0x2f   : > { %p993_p10 = scmp.ne.s32.totalorder %s1246_s10, %s992_s5  ;;  %s997_s21 = scalar_lea.hbm %s1377_s1, 8192 }
  0x30   : > { %p998_p12 = scmp.lt.u32.totalorder %s1246_s10, %s1377_s1  ;;  %p999_p0 = scmp.lt.u32.totalorder %s997_s21, %s992_s5 }
  0x31   : > { %p995_p11 = pnand %p993_p10, %p964_p13  ;;  %p1001_p3 = scmp.lt.u32.totalorder %s992_s5, %s1246_s10 }
  0x32   : > { %p1000_p2 = por %p999_p0, %p998_p12 }
  0x33   : > { %p996_p8 = pneg %p995_p11 }
  0x34   : > { %p1002_p4 = por %p1001_p3, %p1000_p2 }
  0x36   : > { %p1003_p1 = pnand %p1002_p4, %p996_p8 }
  0x38   : > { %1006 = shalt.err (!%p1003_p1)
}
  0x39   : > { %s1007_s27 = scalar_lea.vmem %s1248_s12, 4096  ;;  %s1109_s29 = smov [#allocation6]  }
  0x3a   : > { %p1008_p5 = scmp.ne.s32.totalorder %s1248_s12, %s1007_s27  ;;  %s1012_s4 = sshll.u32 %s1109_s29, 4  ;;  %s1013_s4 = int_to_ptr.vmem [resolvable:$false] %s1012_s4 }
  0x3b   : > { %s1014_s8 = scalar_lea.vmem %s1013_s4, 8192  ;;  %p1015_p7 = scmp.lt.s32.totalorder %s1248_s12, %s1013_s4 }
  0x3c   : > { %p1010_p10 = pnand %p1008_p5, %p964_p13  ;;  %p1016_p12 = scmp.lt.s32.totalorder %s1014_s8, %s1007_s27 }
  0x3e   : > { %p1011_p11 = pneg %p1010_p10  ;;  %p1017_p0 = por %p1016_p12, %p1015_p7 }
  0x40   : > { %p1018_p2 = pnand %p1017_p0, %p1011_p11 }
  0x42   : > { %1021 = shalt.err (!%p1018_p2)
}
  0x43   : > { %s1110_s9 = smov 64   ;;  %s1111_s11 = smov 4  }
  0x44   : > { %870 = dma.hbm_to_vmem [thread:$0]  (!%p1199_p9), %s1246_s10, 4096, %s1248_s12, %s195_s30, %s1110_s9, %s1110_s9, %s1111_s11  }
  0x45   : > { %218 = sbr.rel (%p1237_p6) target bundleno = 379 (0x17b), region = 32  ;;  %s220_s5 = sand.u32 (!%p1237_p6), 1, %s1090_s13  }
  0x46   : > { %s765_s7 = sshll.u32 (!%p1237_p6), %s220_s5, 4  ;;  %s221_s20 = scalar_lea.sflag (!%p1237_p6), [#allocation4], %s220_s5 }
  0x47   : > { %s1279_s21 = scalar_lea.vmem (!%p1237_p6), [#allocation3], %s765_s7  ;;  %p1387_p7 = scmp.ne.s32.totalorder (!%p1237_p6), %s1382_s23, 0 }
  0x4c   : > { %1073 = dma.done.wait (%p1387_p7), %s221_s20, 256  }
  0x4d   : > { %1075 = vsyncadd (%p1387_p7), %s221_s20, 4294967040  ;;  %s766_s22 = sshll.u32 %s220_s5, 8  ;;  %s230_s6 = scalar_lea.sflag [#allocation7], %s220_s5 }
  0x4e   : > { %s1285_s25 = scalar_lea.vmem [#allocation6], %s766_s22 }
  0x4f   : > { %1077 = dma.done.wait (%p1387_p7), %s230_s6, 4096  }
  0x50   : > { %1079 = vsyncadd (%p1387_p7), %s230_s6, 4294963200  ;;  %p767_p9 = scmp.ne.s32.totalorder %s1098_s15, 0 }
  0x51   : > { %v1112_v0 = vmov (!%p767_p9), 0.0  }
  0x52   : > { %268 = sbr.rel (%p767_p9) target bundleno = 89 (0x59), region = 44  ;;  %269 = vst [vmem:[#allocation2] sm:$0xff] (!%p767_p9), %v1112_v0 }
  0x59 PF: > { %v926_v1 = vld [vmem:[%s1285_s25 + $0x40] sm:$0xff]   ;;  %v930_v5 = vld [vmem:[%s1285_s25 + $0x48] sm:$0xff]   ;;  %v934_v9 = vld [vmem:[%s1285_s25 + $0x50] sm:$0xff]   ;;  %p804_p13 = scmp.ne.s32.totalorder %s1098_s15, 1 }
  0x5a   : > { %v927_v2 = vld [vmem:[%s1285_s25 + $0xc0] sm:$0xff]   ;;  %812 = vmatprep.subr.bf16.mxu0 %v926_v1  ;;  %v931_v6 = vld [vmem:[%s1285_s25 + $0xc8] sm:$0xff]   ;;  %v935_v10 = vld [vmem:[%s1285_s25 + $0xd0] sm:$0xff]  }
  0x5b   : > { %v928_v3 = vld [vmem:[%s1285_s25] sm:$0xff]   ;;  %834 = vmatprep.subr.bf16.mxu1 %v927_v2  ;;  %v932_v7 = vld [vmem:[%s1285_s25 + $0x8] sm:$0xff]   ;;  %v936_v11 = vld [vmem:[%s1285_s25 + $0x10] sm:$0xff]  }
  0x5c   : > { %v929_v4 = vld [vmem:[%s1285_s25 + $0x80] sm:$0xff]   ;;  %813 = vmatpush3.bf16.msra.mxu0 %v928_v3  ;;  %v933_v8 = vld [vmem:[%s1285_s25 + $0x88] sm:$0xff]   ;;  %v937_v12 = vld [vmem:[%s1285_s25 + $0x90] sm:$0xff]  }
  0x5d   : > { %835 = vmatpush3.bf16.msra.mxu1 %v929_v4  ;;  %814 = vmatprep.subr.bf16.mxu0 %v930_v5  ;;  %v938_v13 = vld [vmem:[%s1285_s25 + $0x58] sm:$0xff]   ;;  %v942_v17 = vld [vmem:[%s1285_s25 + $0x60] sm:$0xff]   ;;  %v946_v21 = vld [vmem:[%s1285_s25 + $0x68] sm:$0xff]  }
  0x5e   : > { %836 = vmatprep.subr.bf16.mxu1 %v931_v6  ;;  %v939_v14 = vld [vmem:[%s1285_s25 + $0xd8] sm:$0xff]   ;;  %v943_v18 = vld [vmem:[%s1285_s25 + $0xe0] sm:$0xff]   ;;  %v947_v22 = vld [vmem:[%s1285_s25 + $0xe8] sm:$0xff]  }
  0x5f   : > { %v940_v15 = vld [vmem:[%s1285_s25 + $0x18] sm:$0xff]   ;;  %v944_v19 = vld [vmem:[%s1285_s25 + $0x20] sm:$0xff]   ;;  %v948_v23 = vld [vmem:[%s1285_s25 + $0x28] sm:$0xff]  }
  0x60   : > { %815 = vmatpush3.bf16.msra.mxu0 %v932_v7  ;;  %v941_v16 = vld [vmem:[%s1285_s25 + $0x98] sm:$0xff]   ;;  %v945_v20 = vld [vmem:[%s1285_s25 + $0xa0] sm:$0xff]   ;;  %v949_v24 = vld [vmem:[%s1285_s25 + $0xa8] sm:$0xff]  }
  0x61   : > { %837 = vmatpush3.bf16.msra.mxu1 %v933_v8  ;;  %816 = vmatprep.subr.bf16.mxu0 %v934_v9  ;;  %v950_v25 = vld [vmem:[%s1285_s25 + $0x70] sm:$0xff]   ;;  %v954_v29 = vld [vmem:[%s1285_s25 + $0x78] sm:$0xff]  }
  0x62   : > { %838 = vmatprep.subr.bf16.mxu1 %v935_v10  ;;  %v951_v26 = vld [vmem:[%s1285_s25 + $0xf0] sm:$0xff]   ;;  %v955_v30 = vld [vmem:[%s1285_s25 + $0xf8] sm:$0xff]  }
  0x63   : > { %v952_v27 = vld [vmem:[%s1285_s25 + $0x30] sm:$0xff]   ;;  %v956_v31 = vld [vmem:[%s1285_s25 + $0x38] sm:$0xff]  }
  0x64   : > { %817 = vmatpush3.bf16.msra.mxu0 %v936_v11  ;;  %v953_v28 = vld [vmem:[%s1285_s25 + $0xb0] sm:$0xff]   ;;  %v957_v32 = vld [vmem:[%s1285_s25 + $0xb8] sm:$0xff]  }
  0x65   : > { %839 = vmatpush3.bf16.msra.mxu1 %v937_v12  ;;  %818 = vmatprep.subr.bf16.mxu0 %v938_v13  ;;  %v271_v33 = vld [vmem:[%s1279_s21] sm:$0xff]  ;;  %v272_v34 = vld [vmem:[%s1279_s21 + $0x8] sm:$0xff] }
  0x66   : > { %840 = vmatprep.subr.bf16.mxu1 %v939_v14  ;;  %v768_v35 = vcombine.low %v271_v33, %v271_v33  ;;  %v769_v36 = vcombine.high %v271_v33, %v271_v33  ;;  %v770_v37 = vcombine.low %v272_v34, %v272_v34  ;;  %v771_v38 = vcombine.high %v272_v34, %v272_v34  ;;  %v270_v47 = vld [vmem:[#allocation2] sm:$0xff] }
  0x67   : > { %v805_v53 = vld [vmem:[%s1378_s2] ss:$0 sm:$0xff] (!%p804_p13) }
  0x68   : > { %819 = vmatpush3.bf16.msra.mxu0 %v940_v15  ;;  %575 = vmatprep.mubr.bf16.mxu0 %v769_v36 }
  0x69   : > { %841 = vmatpush3.bf16.msra.mxu1 %v941_v16  ;;  %820 = vmatprep.subr.bf16.mxu0 %v942_v17 }
  0x6a   : > { %842 = vmatprep.subr.bf16.mxu1 %v943_v18  ;;  %615 = vmatprep.mubr.bf16.mxu1 %v771_v38 }
  0x6c   : > { %821 = vmatpush3.bf16.msra.mxu0 %v944_v19 }
  0x6d   : > { %843 = vmatpush3.bf16.msra.mxu1 %v945_v20  ;;  %822 = vmatprep.subr.bf16.mxu0 %v946_v21 }
  0x6e   : > { %844 = vmatprep.subr.bf16.mxu1 %v947_v22 }
  0x70   : > { %823 = vmatpush3.bf16.msra.mxu0 %v948_v23 }
  0x71   : > { %845 = vmatpush3.bf16.msra.mxu1 %v949_v24  ;;  %824 = vmatprep.subr.bf16.mxu0 %v950_v25 }
  0x72   : > { %846 = vmatprep.subr.bf16.mxu1 %v951_v26 }
  0x74   : > { %825 = vmatpush3.bf16.msra.mxu0 %v952_v27 }
  0x75   : > { %847 = vmatpush3.bf16.msra.mxu1 %v953_v28  ;;  %826 = vmatprep.subr.bf16.mxu0 %v954_v29 }
  0x76   : > { %848 = vmatprep.subr.bf16.mxu1 %v955_v30 }
  0x78   : > { %827 = vmatpush3.bf16.msra.mxu0 %v956_v31 }
  0x79   : > { %849 = vmatpush3.bf16.msra.mxu1 %v957_v32 }
  0x7b   : > { %576 = vmatmul.mubr.bf16.vlgmr.msra.gmra.mrb[0].mxu0 %v768_v35 }
  0x7c   : > { %616 = vmatmul.mubr.bf16.vlgmr.msra.gmra.mrb[0].mxu1 %v770_v37 }
 0x14e   : > { %v828_v39 = vpop.f32.mrb[0].mxu0 }
 0x14f   : > { %v850_v40 = vpop.f32.mrb[0].mxu1  ;;  %v829_v41 = vpop.f32.mrb[1].mxu0 }
 0x150   : > { %v851_v42 = vpop.f32.mrb[1].mxu1  ;;  %v830_v43 = vadd.f32 %v829_v41, %v828_v39  ;;  %v831_v45 = vpop.f32.mrb[2].mxu0 }
 0x151   : > { %v852_v44 = vadd.f32 %v851_v42, %v850_v40  ;;  %v853_v46 = vpop.f32.mrb[2].mxu1  ;;  %v832_v48 = vpop.f32.mrb[3].mxu0  ;;  %628 = sbr.rel (%p804_p13) target bundleno = 354 (0x162), region = 48 }
 0x152   : > { %v854_v49 = vpop.f32.mrb[3].mxu1 }
 0x153   : > { %v618_v50 = vadd.f32 %v852_v44, %v830_v43 }
 0x155   : > { %v623_v51 = vadd.f32 %v618_v50, %v270_v47 }
 0x157   : > { %624 = vst [vmem:[#allocation2] sm:$0xff] %v623_v51 }
 0x15e   : > { %v629_v52 = vld [vmem:[#allocation2] sm:$0xff] }
 0x15f   : > { %v637_v54 = vadd.f32 %v805_v53, %v629_v52 }
 0x161   : > { %638 = vst [vmem:[#allocation8] sm:$0xff] %v637_v54 }
 0x162 PF: > { %p1332_p6 = scmp.eq.s32.totalorder %s754_s18, 1  ;;  %s1113_s12 = smov [#allocation8]  }
 0x163   : > { %s649_s30 = sshll.u32 %s1113_s12, 4  ;;  %s650_s30 = int_to_ptr.vmem [resolvable:$true] %s649_s30 }
 0x164   : > { %s1022_s15 = scalar_lea.vmem %s650_s30, 128  ;;  %p1029_p1 = scmp.lt.s32.totalorder %s650_s30, %s650_s30 }
 0x165   : > { %p1023_p8 = scmp.ne.s32.totalorder %s650_s30, %s1022_s15  ;;  %p1030_p5 = scmp.lt.s32.totalorder %s1022_s15, %s1022_s15 }
 0x167   : > { %p1024_p3 = pnand %p1023_p8, %p1332_p6  ;;  %p1031_p10 = por %p1030_p5, %p1029_p1 }
 0x169   : > { %p1025_p4 = pneg %p1024_p3 }
 0x16b   : > { %p1032_p11 = pnand %p1031_p10, %p1025_p4 }
 0x16d   : > { %1035 = shalt.err (!%p1032_p11)
}
 0x16e   : > { %s1036_s18 = scalar_lea.hbm %s1379_s3, 128 }
 0x16f   : > { %p1037_p12 = scmp.ne.s32.totalorder %s1379_s3, %s1036_s18  ;;  %p1042_p7 = scmp.lt.u32.totalorder %s1036_s18, %s1379_s3 }
 0x171   : > { %p1038_p0 = pnand %p1037_p12, %p1332_p6 }
 0x173   : > { %p1039_p2 = pneg %p1038_p0 }
 0x175   : > { %p1044_p9 = pnand %p1042_p7, %p1039_p2 }
 0x177   : > { %1047 = shalt.err (!%p1044_p9)
}
 0x178   : > { %861 = dma.vmem_to_hbm [thread:$0]  (%p1332_p6), %s650_s30, 128, %s1379_s3, [#allocation5]  }
 0x179   : > { %1081 = dma.done.wait (%p1332_p6), [#allocation5], 128  }
 0x17a   : > { %1083 = vsyncadd (%p1332_p6), [#allocation5], 4294967168 }
 0x17b PF: > { %s20_s17 = sadd.s32 1, %s1106_s17   ;;  %s1389_s12 = smov %s1090_s13 }
 0x17c   : > { %p17_p13 = scmp.ge.s32.totalorder %s20_s17, 4   ;;  %s1390_s13 = smov %s1094_s14 }
 0x17d   : > { %s1391_s14 = smov %s1185_s24  ;;  %s1392_s15 = smov %s1102_s16 }
 0x17e   : > { %s1393_s16 = smov %s1395_s19  ;;  %19 = sbr.rel (!%p17_p13) target bundleno = 7 (0x7), region = 94 }
 0x185   :  { %662 = vsyncpa [#allocation4], 1 }
 0x186   :  { %664 = vsyncpa [#allocation4 + $0x1], 1 }
 0x187   :  { %665 = vsyncpa [#allocation7], 1 }
 0x188   :  { %667 = vsyncpa [#allocation7 + $0x1], 1 }
 0x189   :  { %668 = vsyncpa [#allocation5], 1 }
 0x18a   :  { %670 = vsyncpa [#allocation5 + $0x1], 1 }

</bundles_post_ra>
